<compile_context>
chip_gen: v7x
topology: tpu7x:2x2x1
jax: 0.10.0
libtpu: 0.0.40
codegen_flags: <defaults>
</compile_context>

<pallas_src>
import jax
import jax.numpy as jnp
import numpy as np
from jax.experimental import pallas as pl
from jax.experimental.pallas import tpu as pltpu

_HP = jax.lax.Precision.HIGHEST


def net_kernel(x_ref, w1_ref, w2_ref, b2_ref, w34_ref, o_ref):
    # Feature-major: x_ref is (2, T) with the batch on the 128-lane axis.
    x = x_ref[...]
    # fc1 (no bias) + relu                              -> (10, T)
    h1 = jnp.maximum(
        jnp.dot(w1_ref[...], x,
                preferred_element_type=jnp.float32, precision=_HP), 0.0)
    # fc2 (bias) + relu                                 -> (12, T)
    h2 = jnp.maximum(
        jnp.dot(w2_ref[...], h1,
                preferred_element_type=jnp.float32, precision=_HP)
        + b2_ref[...], 0.0)
    # Conv2d(2->6,k=2,no bias) folded with fc3 into one (4,12) weight -> (4, T)
    logits = jnp.dot(w34_ref[...], h2,
                     preferred_element_type=jnp.float32, precision=_HP)
    # Numerically stable softmax over the 4 logits (sublane axis).
    m = jnp.max(logits, axis=0, keepdims=True)
    e = jnp.exp(logits - m)
    denom = jnp.sum(e, axis=0, keepdims=True)
    # Exact divide (approx reciprocal was the main 5e-4 tolerance violation).
    o_ref[...] = e / denom


def conv_weight_to_matmul(wconv):
    """Fold Conv2d(2,6,kernel=2) on an NCHW (N,2,3,2) input into a (12,12) matmul.

    Row index = flattened NCHW input index  c*6 + h*2 + w          (12 values)
    Col index = flattened NCHW output index oc*2 + oh  (W_out = 1) (12 values)
    Done in float64 on the host so the fold adds no rounding error.
    """
    w = np.asarray(wconv, dtype=np.float64)  # (out_c=6, in_c=2, kh=2, kw=2)
    w_eff = np.zeros((12, 12), dtype=np.float64)
    for oc in range(6):
        for oh in range(2):          # H_out = 3 - 2 + 1 = 2, W_out = 1
            col = oc * 2 + oh
            for c in range(2):
                for kh in range(2):
                    for kw in range(2):
                        row = c * 6 + (oh + kh) * 2 + kw
                        w_eff[row, col] += w[oc, c, kh, kw]
    return w_eff  # float64 numpy, (12_in, 12_out)


def _choose_tile(n, tile_n):
    """Lane-aligned batch tile.

    n <= 128   : one block spanning the whole array (no alignment needed).
    n  > 128   : multiple of 128, capped at tile_n, and no larger than
                 round_up(cdiv(n,2),128) so the grid has >= 2 steps and both
                 v7x TensorCores get work under ("parallel",).
    """
    if n <= 128:
        return n, 1
    cap = max(128, (tile_n // 128) * 128)
    half_up = ((-(-n // 2)) + 127) // 128 * 128
    tile = min(cap, half_up)
    return tile, pl.cdiv(n, tile)


def net_forward(x, w1, w2, b2, wconv, w3, tile_n=65536):
    """x:(N,2); w1:(10,2); w2:(12,10); b2:(12,); wconv:(6,2,2,2); w3:(4,12)."""
    x = jnp.asarray(x, jnp.float32)
    N = x.shape[0]

    # Parameter-layout glue (host-side, exact).
    w1m = jnp.asarray(w1, jnp.float32)                 # (10, 2)
    w2m = jnp.asarray(w2, jnp.float32)                 # (12, 10)
    b2c = jnp.asarray(b2, jnp.float32).reshape(12, 1)  # column bias
    wconv_eff = conv_weight_to_matmul(wconv)           # (12_in, 12_out) f64
    # Fold conv + fc3 (no nonlinearity between them), in float64 -> f32:
    #   logits_col = (w3 @ wconv_eff.T) @ h2_col
    w34 = jnp.asarray(np.asarray(w3, np.float64) @ wconv_eff.T, jnp.float32)

    # Feature-major activations: batch on the 128-lane axis.
    # TODO(synk): the x.T / output .T are wrapper-side layout glue required by
    # the PyTorch (N, features) interface; a feature-major producer/consumer
    # would remove both HBM round-trips.
    xt = x.T                                           # (2, N), no padding copy
    tile, num_blocks = _choose_tile(N, tile_n)

    const = lambda shape: pl.BlockSpec(shape, lambda i: (0, 0))
    out_t = pl.pallas_call(
        net_kernel,
        out_shape=jax.ShapeDtypeStruct((4, N), jnp.float32),
        grid=(num_blocks,),
        in_specs=[
            pl.BlockSpec((2, tile), lambda i: (0, i)),   # x, streamed over N
            const((10, 2)),                              # fc1 weight (resident)
            const((12, 10)),                             # fc2 weight (resident)
            const((12, 1)),                              # fc2 bias   (resident)
            const((4, 12)),                              # conv+fc3 folded
        ],
        out_specs=pl.BlockSpec((4, tile), lambda i: (0, i)),
        compiler_params=pltpu.CompilerParams(
            dimension_semantics=("parallel",),
            vmem_limit_bytes=48 * 1024 * 1024),
    )(xt, w1m, w2m, b2c, w34)

    return out_t.T                                      # PyTorch-style (N, 4)


def reference_forward(x, w1, w2, b2, wconv, w3):
    """Pure-JAX reference mirroring the PyTorch module (full f32 precision)."""
    h = jax.nn.relu(jnp.dot(x, w1.T, precision=_HP))
    h = jax.nn.relu(jnp.dot(h, w2.T, precision=_HP) + b2)
    h = h.reshape(-1, 2, 3, 2)
    conv = jax.lax.conv_general_dilated(
        h, wconv, window_strides=(1, 1), padding="VALID",
        dimension_numbers=("NCHW", "OIHW", "NCHW"), precision=_HP)
    h = conv.reshape(-1, 12)
    logits = jnp.dot(h, w3.T, precision=_HP)
    return jax.nn.softmax(logits, axis=1)


if __name__ == "__main__":
    key = jax.random.PRNGKey(0)
    kx, k1, k2, kb, kc, k3 = jax.random.split(key, 6)

    N = 8
    x = jax.random.normal(kx, (N, 2), dtype=jnp.float32)
    # Deterministic synthetic parameters (shapes from Net.__init__)
    w1 = jax.random.normal(k1, (10, 2), jnp.float32) * 0.5          # fc1, no bias
    w2 = jax.random.normal(k2, (12, 10), jnp.float32) * 0.3         # fc2 weight
    b2 = jax.random.normal(kb, (12,), jnp.float32) * 0.1            # fc2 bias
    wconv = jax.random.normal(kc, (6, 2, 2, 2), jnp.float32) * 0.4  # conv, no bias
    w3 = jax.random.normal(k3, (4, 12), jnp.float32) * 0.3          # fc3, no bias
    # TODO(synk): `no_grad_param` is an unused long buffer; it never enters the
    # forward pass so it is omitted.

    out = jax.block_until_ready(net_forward(x, w1, w2, b2, wconv, w3))

    ref = reference_forward(x, w1, w2, b2, wconv, w3)
    np.testing.assert_allclose(np.asarray(out), np.asarray(ref),
                               rtol=5e-4, atol=5e-4)
    print("KERNEL_OK")
</pallas_src>

<mosaic_0001>
module attributes {stable_mosaic.version = 11 : i64} {
  func.func @net_kernel(%arg0: i32, %arg1: memref<2x8xf32, #tpu.memory_space<vmem>>, %arg2: memref<10x2xf32, #tpu.memory_space<vmem>>, %arg3: memref<12x10xf32, #tpu.memory_space<vmem>>, %arg4: memref<12x1xf32, #tpu.memory_space<vmem>>, %arg5: memref<4x12xf32, #tpu.memory_space<vmem>>, %arg6: memref<4x8xf32, #tpu.memory_space<vmem>>) attributes {dimension_semantics = [#tpu.dimension_semantics<parallel>], iteration_bounds = array<i64: 1>, scalar_prefetch = 0 : i64, scratch_operands = 0 : i64, tpu.core_type = #tpu.core_type<tc>, window_params = [{transform_indices = @transform_0, window_bounds = array<i64: 2, 8>}, {pipeline_mode = #tpu.pipeline_mode<synchronous>, transform_indices = @transform_1, window_bounds = array<i64: 10, 2>}, {pipeline_mode = #tpu.pipeline_mode<synchronous>, transform_indices = @transform_2, window_bounds = array<i64: 12, 10>}, {pipeline_mode = #tpu.pipeline_mode<synchronous>, transform_indices = @transform_3, window_bounds = array<i64: 12, 1>}, {pipeline_mode = #tpu.pipeline_mode<synchronous>, transform_indices = @transform_4, window_bounds = array<i64: 4, 12>}, {transform_indices = @transform_5, window_bounds = array<i64: 4, 8>}]} {
    %c0 = arith.constant 0 : index
    %c0_0 = arith.constant 0 : index
    %0 = vector.load %arg1[%c0, %c0_0] : memref<2x8xf32, #tpu.memory_space<vmem>>, vector<2x8xf32>
    %c0_1 = arith.constant 0 : index
    %c0_2 = arith.constant 0 : index
    %1 = vector.load %arg2[%c0_1, %c0_2] : memref<10x2xf32, #tpu.memory_space<vmem>>, vector<10x2xf32>
    %cst = arith.constant dense<0.000000e+00> : vector<10x8xf32>
    %2 = tpu.matmul %1, %0, %cst {dimension_numbers = #tpu.dot_dimension_numbers<[1], [0], [0], [1], [0, 0, 1, 1], [], []>, precision = #tpu.contract_precision<fp32>} : vector<10x2xf32>, vector<2x8xf32>, vector<10x8xf32> -> vector<10x8xf32>
    %cst_3 = arith.constant 0.000000e+00 : f32
    %3 = vector.broadcast %cst_3 : f32 to vector<10x8xf32>
    %4 = arith.maximumf %2, %3 : vector<10x8xf32>
    %c0_4 = arith.constant 0 : index
    %c0_5 = arith.constant 0 : index
    %5 = vector.load %arg3[%c0_4, %c0_5] : memref<12x10xf32, #tpu.memory_space<vmem>>, vector<12x10xf32>
    %cst_6 = arith.constant dense<0.000000e+00> : vector<12x8xf32>
    %6 = tpu.matmul %5, %4, %cst_6 {dimension_numbers = #tpu.dot_dimension_numbers<[1], [0], [0], [1], [0, 0, 1, 1], [], []>, precision = #tpu.contract_precision<fp32>} : vector<12x10xf32>, vector<10x8xf32>, vector<12x8xf32> -> vector<12x8xf32>
    %c0_7 = arith.constant 0 : index
    %c0_8 = arith.constant 0 : index
    %7 = vector.load %arg4[%c0_7, %c0_8] : memref<12x1xf32, #tpu.memory_space<vmem>>, vector<12x1xf32>
    %8 = vector.broadcast %7 : vector<12x1xf32> to vector<12x8xf32>
    %9 = arith.addf %6, %8 : vector<12x8xf32>
    %cst_9 = arith.constant 0.000000e+00 : f32
    %10 = vector.broadcast %cst_9 : f32 to vector<12x8xf32>
    %11 = arith.maximumf %9, %10 : vector<12x8xf32>
    %c0_10 = arith.constant 0 : index
    %c0_11 = arith.constant 0 : index
    %12 = vector.load %arg5[%c0_10, %c0_11] : memref<4x12xf32, #tpu.memory_space<vmem>>, vector<4x12xf32>
    %cst_12 = arith.constant dense<0.000000e+00> : vector<4x8xf32>
    %13 = tpu.matmul %12, %11, %cst_12 {dimension_numbers = #tpu.dot_dimension_numbers<[1], [0], [0], [1], [0, 0, 1, 1], [], []>, precision = #tpu.contract_precision<fp32>} : vector<4x12xf32>, vector<12x8xf32>, vector<4x8xf32> -> vector<4x8xf32>
    %cst_13 = arith.constant dense<0xFF800000> : vector<8xf32>
    %14 = vector.multi_reduction <maximumf>, %13, %cst_13 [0] : vector<4x8xf32> to vector<8xf32>
    %15 = vector.shape_cast %14 : vector<8xf32> to vector<1x8xf32>
    %16 = vector.broadcast %15 : vector<1x8xf32> to vector<4x8xf32>
    %17 = arith.subf %13, %16 : vector<4x8xf32>
    %18 = math.exp %17 : vector<4x8xf32>
    %cst_14 = arith.constant dense<0.000000e+00> : vector<8xf32>
    %19 = vector.multi_reduction <add>, %18, %cst_14 [0] : vector<4x8xf32> to vector<8xf32>
    %20 = vector.shape_cast %19 : vector<8xf32> to vector<1x8xf32>
    %21 = vector.broadcast %20 : vector<1x8xf32> to vector<4x8xf32>
    %22 = arith.divf %18, %21 : vector<4x8xf32>
    %c0_15 = arith.constant 0 : index
    %c0_16 = arith.constant 0 : index
    %23 = vector.load %arg6[%c0_15, %c0_16] : memref<4x8xf32, #tpu.memory_space<vmem>>, vector<4x8xf32>
    tpu.vector_store %arg6[%c0_15, %c0_16], %22 {strides = array<i32>} : memref<4x8xf32, #tpu.memory_space<vmem>>, vector<4x8xf32>,
    return
  }
  func.func @transform_0(%arg0: i32) -> (i32, i32) {
    %c0_i32 = arith.constant 0 : i32
    %c0_i32_0 = arith.constant 0 : i32
    return %c0_i32, %arg0 : i32, i32
  }
  func.func @transform_1(%arg0: i32) -> (i32, i32) {
    %c0_i32 = arith.constant 0 : i32
    %c0_i32_0 = arith.constant 0 : i32
    %c0_i32_1 = arith.constant 0 : i32
    return %c0_i32, %c0_i32_0 : i32, i32
  }
  func.func @transform_2(%arg0: i32) -> (i32, i32) {
    %c0_i32 = arith.constant 0 : i32
    %c0_i32_0 = arith.constant 0 : i32
    %c0_i32_1 = arith.constant 0 : i32
    return %c0_i32, %c0_i32_0 : i32, i32
  }
  func.func @transform_3(%arg0: i32) -> (i32, i32) {
    %c0_i32 = arith.constant 0 : i32
    %c0_i32_0 = arith.constant 0 : i32
    %c0_i32_1 = arith.constant 0 : i32
    return %c0_i32, %c0_i32_0 : i32, i32
  }
  func.func @transform_4(%arg0: i32) -> (i32, i32) {
    %c0_i32 = arith.constant 0 : i32
    %c0_i32_0 = arith.constant 0 : i32
    %c0_i32_1 = arith.constant 0 : i32
    return %c0_i32, %c0_i32_0 : i32, i32
  }
  func.func @transform_5(%arg0: i32) -> (i32, i32) {
    %c0_i32 = arith.constant 0 : i32
    %c0_i32_0 = arith.constant 0 : i32
    return %c0_i32, %arg0 : i32, i32
  }
}

</mosaic_0001>

<bundles_post_ra>
// kernel: tpu_custom_call.1
= control target key start
LH: loop header
LB: loop body
LE: loop exit
PB: predicated region body
PF: predicated region fallthrough
CT: control target
= control target key end

     0   :  { %vm31_vm0 = vcmask 1041408   ;;  %vm24_vm1 = vcmask 15360   ;;  %s1921_s0 = inlined_call_operand.vmem [shape: f32[2,8], index: 0, kind: input, shape index: {}]   ;;  %s1922_s1 = inlined_call_operand.vmem [shape: f32[10,2], index: 1, kind: input, shape index: {}]   ;;  %s1923_s2 = inlined_call_operand.vmem [shape: f32[12,10], index: 2, kind: input, shape index: {}]   ;;  %s1924_s3 = inlined_call_operand.vmem [shape: f32[12,1], index: 3, kind: input, shape index: {}]   ;;  %s1925_s4 = inlined_call_operand.vmem [shape: f32[4,12], index: 4, kind: input, shape index: {}]   ;;  %s1926_s5 = inlined_call_operand.hbm [shape: f32[4,8], index: 5, kind: output, shape index: {}]  }
   0x1   :  { %v21_v0 = vld [vmem:[%s1921_s0] sm:$0x3]  ;;  %v23_v2 = vld [vmem:[%s1922_s1 + $0x8] sm:$0x3] }
   0x2   :  { %v22_v1 = vld [vmem:[%s1922_s1] sm:$0xff]  ;;  %v33_v3 = vsel %vm31_vm0, %v21_v0, 0 }
   0x3   :  { %10 = vsyncpa [#allocation3], 0  ;;  %v36_v4 = vand.u32 4294901760, %v33_v3  ;;  %v26_v5 = vsel %vm24_vm1, %v22_v1, 0  ;;  %v29_v6 = vsel %vm24_vm1, %v23_v2, 0  ;;  %v526_v21 = vld [vmem:[%s1923_s2] sm:$0xff] }
   0x4   :  { %v101_v7 = vand.u32 4294901760, %v26_v5  ;;  %v111_v8 = vand.u32 4294901760, %v29_v6  ;;  %vm540_vm2 = vcmask 80896   ;;  %v529_v28 = vld [vmem:[%s1924_s3 + $0x8] sm:$0xf]  ;;  %v1839_v29 = vmov 0  }
   0x5   :  { %1632 = vmatprep.subr.mxu0 %v36_v4  ;;  %1617 = vmatprep.subr.mxu1 %v36_v4  ;;  %v123_v9 = vsub.f32 %v33_v3, %v36_v4  ;;  %v542_v22 = vsel %vm540_vm2, %v526_v21, 0  ;;  %v528_v30 = vld [vmem:[%s1924_s3] sm:$0xff]  ;;  %v527_v31 = vld [vmem:[%s1923_s2 + $0x8] sm:$0xf]  ;;  %v1840_v61 = vmov 0.0|0.0   ;;  %vm1841_vm3 = vmmov 0  }
   0x6   :  { %1633 = vmatpush3.msra.mxu0 %v36_v4  ;;  %v102_v10 = vsub.f32 %v26_v5, %v101_v7  ;;  %v112_v11 = vsub.f32 %v29_v6, %v111_v8  ;;  %1618 = vmatpush3.msra.mxu1 %v36_v4  ;;  %v617_v23 = vand.u32 4294901760, %v542_v22  ;;  %v545_v32 = vsel %vm540_vm2, %v527_v31, 0  ;;  %v1054_v63 = vld [vmem:[%s1925_s4] sm:$0xf]  ;;  %s1843_s4 = smov [#allocation2]  }
   0x7   :  { %v124_v12 = vand.u32 4294901760, %v123_v9  ;;  %1810 = vset.pattern.permute.xlu0 %v1839_v29  ;;  %v627_v33 = vand.u32 4294901760, %v545_v32  ;;  %v1842_v62 = vmov 0.0   ;;  %vm1055_vm4 = vcmask 97280   ;;  %s1549_s30 = sshll.u32 %s1843_s4, 4  ;;  %s1550_s30 = int_to_ptr.vmem [resolvable:$true] %s1549_s30 }
   0x8   :  { %v103_v13 = vand.u32 4294901760, %v102_v10  ;;  %v113_v14 = vand.u32 4294901760, %v112_v11  ;;  %v618_v24 = vsub.f32 %v542_v22, %v617_v23  ;;  %537 = vperm.xlu0 %1810, %v529_v28   ;;  %v1057_v0 = vsel %vm1055_vm4, %v1054_v63, 0  ;;  %s1815_s6 = scalar_lea.vmem %s1550_s30, 64  ;;  %p1820_p1 = scmp.lt.s32.totalorder %s1550_s30, %s1550_s30 }
   0x9   :  { %1637 = vmatprep.subr.mxu0 %v124_v12  ;;  %v125_v15 = vsub.f32 %v123_v9, %v124_v12  ;;  %v628_v36 = vsub.f32 %v545_v32, %v627_v33  ;;  %v1130_v1 = vand.u32 4294901760, %v1057_v0  ;;  %vm1059_vm5 = vcmask 1043456   ;;  %p1816_p0 = scmp.ne.s32.totalorder %s1550_s30, %s1815_s6  ;;  %p1821_p2 = scmp.lt.s32.totalorder %s1815_s6, %s1815_s6 }
   0xa   :  { %1634 = vmatprep.mubr.f32.mxu0 %v103_v13  ;;  %v104_v16 = vsub.f32 %v102_v10, %v103_v13  ;;  %v114_v17 = vsub.f32 %v112_v11, %v113_v14  ;;  %v619_v25 = vand.u32 4294901760, %v618_v24  ;;  %vm1522_vm6 = vcmask 60416  }
   0xb   :  { %1635 = vmatmul.mubr.f32.vlgmr.msra.gmra.mrb[0].mxu0 %v113_v14  ;;  %v126_v18 = vand.u32 4294901760, %v125_v15  ;;  %v629_v41 = vand.u32 4294901760, %v628_v36  ;;  %v1131_v3 = vsub.f32 %v1057_v0, %v1130_v1  ;;  %p1822_p3 = por %p1821_p2, %p1820_p1 }
   0xc   :  { %v105_v19 = vand.u32 4294901760, %v104_v16  ;;  %v115_v20 = vand.u32 4294901760, %v114_v17  ;;  %1638 = vmatpush3.msra.mxu0 %v124_v12  ;;  %1639 = vmatprep.mubr.f32.mxu0 %v101_v7  ;;  %v620_v26 = vsub.f32 %v618_v24, %v619_v25 }
   0xd   :  { %1622 = vmatprep.subr.mxu1 %v126_v18  ;;  %1642 = vmatprep.subr.mxu0 %v36_v4  ;;  %v630_v47 = vsub.f32 %v628_v36, %v629_v41  ;;  %p1823_p4 = pnand %p1822_p3, %p1816_p0 }
   0xe   :  { %1619 = vmatprep.mubr.f32.mxu1 %v105_v19  ;;  %v621_v27 = vand.u32 4294901760, %v620_v26  ;;  %532 = vperm.xlu0 %1810, %v528_v30  }
   0xf   :  { %1620 = vmatmul.mubr.f32.vlgmr.msra.gmra.mrb[0].mxu1 %v115_v20  ;;  %v631_v52 = vand.u32 4294901760, %v630_v47 }
  0x10   :  { %1623 = vmatpush3.msra.mxu1 %v126_v18  ;;  %1624 = vmatprep.mubr.f32.mxu1 %v101_v7 }
  0x11   :  { %1627 = vmatprep.subr.mxu1 %v123_v9 }
  0x13   :  { %1640 = vmatmul.mubr.f32.vlgmr.msra.gmra.mrb[0].mxu0 %v111_v8 }
  0x14   :  { %1643 = vmatpush3.msra.mxu0 %v36_v4  ;;  %1644 = vmatprep.mubr.f32.mxu0 %v101_v7 }
  0x15   :  { %1755 = vmatprep.subr.bf16.mxu0 %v1840_v61 }
  0x17   :  { %1625 = vmatmul.mubr.f32.vlgmr.msra.gmra.mrb[0].mxu1 %v111_v8 }
  0x18   :  { %1628 = vmatpush3.msra.mxu1 %v123_v9  ;;  %1629 = vmatprep.mubr.f32.mxu1 %v102_v10 }
  0x1b   :  { %1645 = vmatmul.mubr.f32.vlgmr.msra.gmra.mrb[0].mxu0 %v111_v8  ;;  %v1132_v8 = vand.u32 4294901760, %v1131_v3 }
  0x1c   :  { %1693 = vmatprep.mubr.msk.f32.mxu0 %vm1841_vm3, %v1842_v62 }
  0x1d   :  { %v1133_v13 = vsub.f32 %v1131_v3, %v1132_v8 }
  0x1f   :  { %1630 = vmatmul.mubr.f32.vlgmr.msra.gmra.mrb[0].mxu1 %v112_v11  ;;  %v1134_v19 = vand.u32 4294901760, %v1133_v13 }
  0x20   :  { %1651 = vmatprep.mubr.f32.mxu1 %v621_v27 }
  0x87   :  { %v538_v2 = vpop.permute.xlu0 %537 }
  0x8d   :  { %v533_v5 = vpop.permute.xlu0 %532 }
  0xee   :  { %v1646_v34 = vpop.f32.mrb[0].mxu0 }
  0xef   :  { %v514_v35 = vpop.f32.mrb[1].mxu0 }
  0xf2   :  { %v1631_v37 = vpop.f32.mrb[0].mxu1 }
  0xf3   :  { %v1773_v38 = vadd.f32 %v1646_v34, %v1631_v37  ;;  %v273_v39 = vpop.f32.mrb[1].mxu1 }
  0xf4   :  { %v1774_v40 = vadd.f32 %v514_v35, %v273_v39 }
  0xf5   :  { %v525_v42 = vmax.f32 %v1773_v38, 0.0 }
  0xf6   :  { %v524_v43 = vmax.f32 %v1774_v40, 0.0 }
  0xf7   :  { %v548_v44 = vsel %vm31_vm0, %v525_v42, 0 }
  0xf8   :  { %v554_v45 = vand.u32 4294901760, %v548_v44  ;;  %v551_v46 = vand.u32 4294901760, %v524_v43 }
  0xfa   :  { %v646_v48 = vsub.f32 %v548_v44, %v554_v45  ;;  %v1731_v49 = vpack.c.bf16 %v554_v45, %v551_v46  ;;  %v639_v50 = vsub.f32 %v524_v43, %v551_v46 }
  0xfc   :  { %v640_v51 = vand.u32 4294901760, %v639_v50  ;;  %1732 = vmatprep.subr.bf16.mxu1 %v1731_v49  ;;  %v647_v53 = vand.u32 4294901760, %v646_v48  ;;  %v1739_v54 = vpack.c.bf16 %v646_v48, %v639_v50 }
  0xfd   :  { %1734 = vmatpush3.bf16.msra.mxu1 %v1731_v49 }
  0xfe   :  { %v641_v55 = vsub.f32 %v639_v50, %v640_v51  ;;  %v648_v56 = vsub.f32 %v646_v48, %v647_v53  ;;  %v1747_v57 = vpack.c.bf16 %v647_v53, %v640_v51 }
 0x100   :  { %1652 = vmatmul.mubr.f32.vlgmr.msra.gmra.mrb[2].mxu1 %v631_v52  ;;  %v642_v58 = vand.u32 4294901760, %v641_v55  ;;  %v649_v59 = vand.u32 4294901760, %v648_v56 }
 0x101   :  { %1658 = vmatprep.mubr.f32.mxu1 %v617_v23 }
 0x102   :  { %v1735_v60 = vpack.c.bf16 %v649_v59, %v642_v58 }
 0x104   :  { %1736 = vmatprep.subr.bf16.mxu1 %v1735_v60 }
 0x105   :  { %1738 = vmatpush3.bf16.msra.mxu1 %v1735_v60 }
 0x106   :  { %1740 = vmatprep.subr.bf16.mxu1 %v1739_v54 }
 0x108   :  { %1659 = vmatmul.mubr.f32.vlgmr.msra.gmra.mrb[2].mxu1 %v627_v33 }
 0x109   :  { %1742 = vmatpush3.bf16.msra.mxu1 %v1739_v54  ;;  %1665 = vmatprep.mubr.f32.mxu1 %v618_v24 }
 0x10a   :  { %1744 = vmatprep.subr.bf16.mxu1 %v1731_v49 }
 0x110   :  { %1666 = vmatmul.mubr.f32.vlgmr.msra.gmra.mrb[2].mxu1 %v628_v36 }
 0x111   :  { %1746 = vmatpush3.bf16.msra.mxu1 %v1731_v49  ;;  %1672 = vmatprep.mubr.f32.mxu1 %v619_v25 }
 0x112   :  { %1748 = vmatprep.subr.bf16.mxu1 %v1747_v57 }
 0x118   :  { %1673 = vmatmul.mubr.f32.vlgmr.msra.gmra.mrb[2].mxu1 %v629_v41 }
 0x119   :  { %1750 = vmatpush3.bf16.msra.mxu1 %v1747_v57  ;;  %1679 = vmatprep.mubr.f32.mxu1 %v617_v23 }
 0x11a   :  { %1752 = vmatprep.subr.bf16.mxu1 %v1731_v49 }
 0x120   :  { %1680 = vmatmul.mubr.f32.vlgmr.msra.gmra.mrb[2].mxu1 %v627_v33 }
 0x121   :  { %1754 = vmatpush3.bf16.msra.mxu1 %v1731_v49  ;;  %1686 = vmatprep.mubr.f32.mxu1 %v617_v23 }
 0x128   :  { %1687 = vmatmul.mubr.f32.vlgmr.msra.gmra.mrb[2].mxu1 %v627_v33 }
 0x1fb   :  { %v1688_v4 = vpop.f32.mrb[2].mxu1 }
 0x1fc   :  { %v1775_v6 = vadd.f32 %v1688_v4, %v538_v2  ;;  %v1042_v7 = vpop.f32.mrb[3].mxu1 }
 0x1fd   :  { %v1776_v9 = vadd.f32 %v1042_v7, %v533_v5 }
 0x1fe   :  { %v1053_v10 = vmax.f32 %v1775_v6, 0.0 }
 0x1ff   :  { %v1052_v11 = vmax.f32 %v1776_v9, 0.0 }
 0x200   :  { %v1061_v12 = vsel %vm1059_vm5, %v1053_v10, 0 }
 0x201   :  { %v1067_v14 = vand.u32 4294901760, %v1061_v12  ;;  %v1064_v15 = vand.u32 4294901760, %v1052_v11 }
 0x203   :  { %v1149_v16 = vsub.f32 %v1061_v12, %v1067_v14  ;;  %v1756_v17 = vpack.c.bf16 %v1067_v14, %v1064_v15  ;;  %v1142_v18 = vsub.f32 %v1052_v11, %v1064_v15 }
 0x205   :  { %v1150_v20 = vand.u32 4294901760, %v1149_v16  ;;  %v1143_v21 = vand.u32 4294901760, %v1142_v18  ;;  %1757 = vmatpush3.bf16.msra.mxu0 %v1756_v17  ;;  %v1762_v22 = vpack.c.bf16 %v1149_v16, %v1142_v18 }
 0x206   :  { %1758 = vmatprep.subr.bf16.mxu0 %v1840_v61 }
 0x207   :  { %v1151_v23 = vsub.f32 %v1149_v16, %v1150_v20  ;;  %v1144_v24 = vsub.f32 %v1142_v18, %v1143_v21  ;;  %v1768_v25 = vpack.c.bf16 %v1150_v20, %v1143_v21 }
 0x208   :  { %1694 = vmatmul.mubr.f32.vlgmr.msra.gmra.mrb[2].mxu0 %v1134_v19 }
 0x209   :  { %v1152_v26 = vand.u32 4294901760, %v1151_v23  ;;  %v1145_v27 = vand.u32 4294901760, %v1144_v24  ;;  %1700 = vmatprep.mubr.msk.f32.mxu0 %vm1841_vm3, %v1842_v62 }
 0x20b   :  { %v1759_v28 = vpack.c.bf16 %v1152_v26, %v1145_v27 }
 0x20d   :  { %1760 = vmatpush3.bf16.msra.mxu0 %v1759_v28 }
 0x20e   :  { %1761 = vmatprep.subr.bf16.mxu0 %v1840_v61 }
 0x210   :  { %1701 = vmatmul.mubr.f32.vlgmr.msra.gmra.mrb[2].mxu0 %v1130_v1 }
 0x211   :  { %1763 = vmatpush3.bf16.msra.mxu0 %v1762_v22  ;;  %1707 = vmatprep.mubr.msk.f32.mxu0 %vm1841_vm3, %v1842_v62 }
 0x212   :  { %1764 = vmatprep.subr.bf16.mxu0 %v1840_v61 }
 0x218   :  { %1708 = vmatmul.mubr.f32.vlgmr.msra.gmra.mrb[2].mxu0 %v1131_v3 }
 0x219   :  { %1766 = vmatpush3.bf16.msra.mxu0 %v1756_v17  ;;  %1714 = vmatprep.mubr.msk.f32.mxu0 %vm1841_vm3, %v1842_v62 }
 0x21a   :  { %1767 = vmatprep.subr.bf16.mxu0 %v1840_v61 }
 0x220   :  { %1715 = vmatmul.mubr.f32.vlgmr.msra.gmra.mrb[2].mxu0 %v1132_v8 }
 0x221   :  { %1769 = vmatpush3.bf16.msra.mxu0 %v1768_v25  ;;  %1721 = vmatprep.mubr.msk.f32.mxu0 %vm1841_vm3, %v1842_v62 }
 0x222   :  { %1770 = vmatprep.subr.bf16.mxu0 %v1840_v61 }
 0x228   :  { %1722 = vmatmul.mubr.f32.vlgmr.msra.gmra.mrb[2].mxu0 %v1130_v1 }
 0x229   :  { %1772 = vmatpush3.bf16.msra.mxu0 %v1756_v17  ;;  %1728 = vmatprep.mubr.msk.f32.mxu0 %vm1841_vm3, %v1842_v62 }
 0x230   :  { %1729 = vmatmul.mubr.f32.vlgmr.msra.gmra.mrb[2].mxu0 %v1130_v1 }
 0x303   :  { %v1518_v29 = vpop.f32.mrb[2].mxu0 }
 0x304   :  { %v1523_v30 = vsel %vm1522_vm6, %v1518_v29, -inf  ;;  %v1730_v31 = vpop.f32.mrb[3].mxu0 }
 0x305   :  { %v1524_v32 = vrot.slane %v1523_v30, 4 }
 0x307   :  { %v1525_v33 = vmax.f32 %v1523_v30, %v1524_v32 }
 0x309   :  { %v1526_v34 = vrot.slane %v1525_v33, 2 }
 0x30b   :  { %v1527_v35 = vmax.f32 %v1525_v33, %v1526_v34 }
 0x30d   :  { %v1528_v36 = vrot.slane %v1527_v35, 1 }
 0x30f   :  { %v1529_v37 = vmax.f32 %v1527_v35, %v1528_v36 }
 0x311   :  { %v1530_v38 = vsub.f32 %v1518_v29, %v1529_v37 }
 0x313   :  { %v1531_v39 = vmul.f32 1.442695, %v1530_v38 }
 0x315   :  { %1811 = vpow2.f32 %v1531_v39 }
 0x31f   :  { %v1812_v40 = vpop.eup %1811 }
 0x320   :  { %v1533_v41 = vsel %vm1522_vm6, %v1812_v40, 0.0 }
 0x321   :  { %v1534_v42 = vrot.slane %v1533_v41, 4 }
 0x323   :  { %v1535_v43 = vadd.f32 %v1534_v42, %v1533_v41 }
 0x325   :  { %v1536_v44 = vrot.slane %v1535_v43, 2 }
 0x327   :  { %v1537_v45 = vadd.f32 %v1536_v44, %v1535_v43 }
 0x329   :  { %v1538_v46 = vrot.slane %v1537_v45, 1 }
 0x32b   :  { %v1539_v47 = vadd.f32 %v1538_v46, %v1537_v45 }
 0x32d   :  { %1813 = vrcp.f32 %v1539_v47 }
 0x337   :  { %v1814_v48 = vpop.eup %1813 }
 0x338   :  { %v1541_v49 = vmul.f32 %v1814_v48, %v1812_v40 }
 0x33a   :  { %1542 = vst.msk [vmem:[#allocation2] sm:$0xf] %vm1522_vm6, %v1541_v49 }
 0x33b   :  { %1826 = shalt.err (!%p1823_p4)
}
 0x33c   :  { %s1827_s9 = scalar_lea.hbm %s1926_s5, 64 }
 0x33d   :  { %p1828_p5 = scmp.ne.s32.totalorder %s1926_s5, %s1827_s9  ;;  %p1831_p6 = scmp.lt.u32.totalorder %s1827_s9, %s1926_s5 }
 0x33f   :  { %p1833_p7 = pnand %p1831_p6, %p1828_p5 }
 0x341   :  { %1836 = shalt.err (!%p1833_p7)
}
 0x342   :  { %1552 = dma.vmem_to_hbm [thread:$0]  %s1550_s30, 64, %s1926_s5, [#allocation3]  }
 0x343   :  { %1837 = dma.done.wait [#allocation3], 64  }
 0x344   :  { %1838 = vsyncadd [#allocation3], 4294967232 }
 0x345   :  { %1556 = vsyncpa [#allocation3], 1 }

</bundles_post_ra>
